<compile_context>
chip_gen: v7x
topology: tpu7x:2x2x1
jax: 0.10.0
libtpu: 0.0.40
codegen_flags: <defaults>
</compile_context>

<pallas_src>
import jax
import jax.numpy as jnp
from jax.experimental import pallas as pl
from jax.experimental.pallas import tpu as pltpu

N_INPUTS = 28 * 28   # 784
N_OUTPUTS = 10


def _round_up(x, m):
    return ((x + m - 1) // m) * m


def logistic_kernel(x_ref, wt_ref, b_ref, o_ref):
    # z = x @ W^T + b : f32 operands, f32 accumulation on the MXU.
    z = jnp.dot(x_ref[...], wt_ref[...], preferred_element_type=jnp.float32)
    z = z + b_ref[...]                       # broadcast (1, 10) over (tb, 10)
    # Exact sigmoid in f32: exp hits the EUP, one divide on the VPU — both
    # fully hidden under the x tile DMA.
    o_ref[...] = (1.0 / (1.0 + jnp.exp(-z))).astype(o_ref.dtype)


def logistic_regression(x, weight, bias, *, tb=2048):
    """x: (B, 784) f32, weight: (10, 784) f32, bias: (10,) f32 -> (B, 10) f32."""
    B = x.shape[0]
    x = x.astype(jnp.float32)

    # Glue in plain JAX (tiny, one-time): transpose weight, bias to (1, 10).
    wt = weight.T.astype(jnp.float32)                    # (784, 10)
    b2 = bias.reshape(1, N_OUTPUTS).astype(jnp.float32)

    # Batch tile: divisible by 8 (sublane constraint), capped at ceil(B/2) so
    # the grid has >= 2 steps on v7x when B > 8; floor of 8 rows.
    tb = max(8, min(tb, _round_up(pl.cdiv(B, 2), 8)))
    grid = (pl.cdiv(B, tb),)                             # partial last tile OK

    out = pl.pallas_call(
        logistic_kernel,
        out_shape=jax.ShapeDtypeStruct((B, N_OUTPUTS), jnp.float32),
        grid_spec=pltpu.PrefetchScalarGridSpec(
            num_scalar_prefetch=0,
            grid=grid,
            in_specs=[
                # x: streamed per batch tile (double-buffered by Pallas).
                pl.BlockSpec((tb, N_INPUTS), lambda i: (i, 0)),
                # weight / bias: constant block index -> resident, DMA'd once.
                pl.BlockSpec((N_INPUTS, N_OUTPUTS), lambda i: (0, 0)),
                pl.BlockSpec((1, N_OUTPUTS), lambda i: (0, 0)),
            ],
            out_specs=pl.BlockSpec((tb, N_OUTPUTS), lambda i: (i, 0)),
        ),
        compiler_params=pltpu.CompilerParams(
            dimension_semantics=("parallel",),           # megacore split on v7x
            vmem_limit_bytes=32 * 1024 * 1024,           # ~13 MiB used at tb=2048
        ),
        cost_estimate=pl.CostEstimate(
            flops=2 * B * N_INPUTS * N_OUTPUTS,
            transcendentals=B * N_OUTPUTS,
            bytes_accessed=(B * N_INPUTS * 4              # f32 x read (dominant)
                            + N_INPUTS * N_OUTPUTS * 4    # f32 weight read (once)
                            + N_OUTPUTS * 4               # bias read
                            + B * N_OUTPUTS * 4),         # f32 output write
        ),
    )(x, wt, b2)
    return out


def _reference(x, weight, bias):
    # Exact f32 path, same as torch.sigmoid(nn.Linear(x)) in f32.
    return jax.nn.sigmoid(jnp.dot(x, weight.T) + bias)


if __name__ == "__main__":
    key = jax.random.PRNGKey(0)
    kx, kw, kb = jax.random.split(key, 3)

    # Deterministic PyTorch-style Linear init: U(-1/sqrt(fan_in), 1/sqrt(fan_in))
    bound = 1.0 / (N_INPUTS ** 0.5)
    weight = jax.random.uniform(kw, (N_OUTPUTS, N_INPUTS), jnp.float32, -bound, bound)
    bias = jax.random.uniform(kb, (N_OUTPUTS,), jnp.float32, -bound, bound)

    # Small batch: single grid step.
    B = 8
    x = jax.random.normal(kx, (B, N_INPUTS), jnp.float32)
    y = logistic_regression(x, weight, bias)
    jax.block_until_ready(y)
    assert y.shape == (B, N_OUTPUTS)
    assert jnp.allclose(y, _reference(x, weight, bias), atol=1e-5), "mismatch (B=8)"

    # Multi-step grid + partial last tile (40 = 16 + 16 + 8, masked writeback).
    B2 = 40
    x2 = jax.random.normal(kx, (B2, N_INPUTS), jnp.float32)
    y2 = logistic_regression(x2, weight, bias, tb=16)    # grid=(3,)
    jax.block_until_ready(y2)
    assert y2.shape == (B2, N_OUTPUTS)
    assert jnp.allclose(y2, _reference(x2, weight, bias), atol=1e-5), "mismatch (B=40)"

    print("KERNEL_OK")
</pallas_src>

<mosaic_0001>
module attributes {stable_mosaic.version = 11 : i64} {
  func.func @logistic_kernel(%arg0: i32, %arg1: memref<8x784xf32, #tpu.memory_space<vmem>>, %arg2: memref<784x10xf32, #tpu.memory_space<vmem>>, %arg3: memref<1x10xf32, #tpu.memory_space<vmem>>, %arg4: memref<8x10xf32, #tpu.memory_space<vmem>>) attributes {dimension_semantics = [#tpu.dimension_semantics<parallel>], iteration_bounds = array<i64: 1>, scalar_prefetch = 0 : i64, scratch_operands = 0 : i64, tpu.core_type = #tpu.core_type<tc>, window_params = [{transform_indices = @transform_0, window_bounds = array<i64: 8, 784>}, {pipeline_mode = #tpu.pipeline_mode<synchronous>, transform_indices = @transform_1, window_bounds = array<i64: 784, 10>}, {pipeline_mode = #tpu.pipeline_mode<synchronous>, transform_indices = @transform_2, window_bounds = array<i64: 1, 10>}, {transform_indices = @transform_3, window_bounds = array<i64: 8, 10>}]} {
    %c0 = arith.constant 0 : index
    %c0_0 = arith.constant 0 : index
    %0 = vector.load %arg1[%c0, %c0_0] : memref<8x784xf32, #tpu.memory_space<vmem>>, vector<8x784xf32>
    %c0_1 = arith.constant 0 : index
    %c0_2 = arith.constant 0 : index
    %1 = vector.load %arg2[%c0_1, %c0_2] : memref<784x10xf32, #tpu.memory_space<vmem>>, vector<784x10xf32>
    %cst = arith.constant dense<0.000000e+00> : vector<8x10xf32>
    %2 = tpu.matmul %0, %1, %cst {dimension_numbers = #tpu.dot_dimension_numbers<[1], [0], [0], [1], [0, 0, 1, 1], [], []>} : vector<8x784xf32>, vector<784x10xf32>, vector<8x10xf32> -> vector<8x10xf32>
    %c0_3 = arith.constant 0 : index
    %c0_4 = arith.constant 0 : index
    %3 = vector.load %arg3[%c0_3, %c0_4] : memref<1x10xf32, #tpu.memory_space<vmem>>, vector<1x10xf32>
    %4 = vector.broadcast %3 : vector<1x10xf32> to vector<8x10xf32>
    %5 = arith.addf %2, %4 : vector<8x10xf32>
    %cst_5 = arith.constant 0.000000e+00 : f32
    %6 = vector.broadcast %cst_5 : f32 to vector<8x10xf32>
    %7 = arith.subf %6, %5 : vector<8x10xf32>
    %8 = math.exp %7 : vector<8x10xf32>
    %cst_6 = arith.constant 1.000000e+00 : f32
    %9 = vector.broadcast %cst_6 : f32 to vector<8x10xf32>
    %10 = arith.addf %9, %8 : vector<8x10xf32>
    %cst_7 = arith.constant 1.000000e+00 : f32
    %11 = vector.broadcast %cst_7 : f32 to vector<8x10xf32>
    %12 = arith.divf %11, %10 : vector<8x10xf32>
    %c0_8 = arith.constant 0 : index
    %c0_9 = arith.constant 0 : index
    %13 = vector.load %arg4[%c0_8, %c0_9] : memref<8x10xf32, #tpu.memory_space<vmem>>, vector<8x10xf32>
    tpu.vector_store %arg4[%c0_8, %c0_9], %12 {strides = array<i32>} : memref<8x10xf32, #tpu.memory_space<vmem>>, vector<8x10xf32>,
    return
  }
  func.func @transform_0(%arg0: i32) -> (i32, i32) {
    %c0_i32 = arith.constant 0 : i32
    %c0_i32_0 = arith.constant 0 : i32
    return %arg0, %c0_i32 : i32, i32
  }
  func.func @transform_1(%arg0: i32) -> (i32, i32) {
    %c0_i32 = arith.constant 0 : i32
    %c0_i32_0 = arith.constant 0 : i32
    %c0_i32_1 = arith.constant 0 : i32
    return %c0_i32, %c0_i32_0 : i32, i32
  }
  func.func @transform_2(%arg0: i32) -> (i32, i32) {
    %c0_i32 = arith.constant 0 : i32
    %c0_i32_0 = arith.constant 0 : i32
    %c0_i32_1 = arith.constant 0 : i32
    return %c0_i32, %c0_i32_0 : i32, i32
  }
  func.func @transform_3(%arg0: i32) -> (i32, i32) {
    %c0_i32 = arith.constant 0 : i32
    %c0_i32_0 = arith.constant 0 : i32
    return %arg0, %c0_i32 : i32, i32
  }
}

</mosaic_0001>

<bundles_post_ra>
// kernel: tpu_custom_call.1
= control target key start
LH: loop header
LB: loop body
LE: loop exit
PB: predicated region body
PF: predicated region fallthrough
CT: control target
= control target key end

     0   :  { %s1035_s0 = inlined_call_operand.vmem [shape: f32[8,784], index: 0, kind: input, shape index: {}]   ;;  %s1036_s1 = inlined_call_operand.vmem [shape: f32[784,10], index: 1, kind: input, shape index: {}]   ;;  %s1037_s2 = inlined_call_operand.vmem [shape: f32[1,10], index: 2, kind: input, shape index: {}]   ;;  %s1038_s3 = inlined_call_operand.hbm [shape: f32[8,10], index: 3, kind: output, shape index: {}]  }
   0x1   :  { %v38_v0 = vld [vmem:[%s1036_s1 + $0x80] sm:$0xff]  ;;  %v39_v1 = vld [vmem:[%s1036_s1 + $0x88] sm:$0xff]  ;;  %v40_v11 = vld [vmem:[%s1036_s1 + $0x90] sm:$0xff] }
   0x2   :  { %v22_v2 = vld [vmem:[%s1036_s1] sm:$0xff]  ;;  %v550_v3 = vpack.c.bf16 %v39_v1, %v38_v0  ;;  %v23_v4 = vld [vmem:[%s1036_s1 + $0x8] sm:$0xff]  ;;  %v41_v13 = vld [vmem:[%s1036_s1 + $0x98] sm:$0xff] }
   0x3   :  { %v70_v5 = vld [vmem:[%s1036_s1 + $0x180] sm:$0xff]  ;;  %v71_v6 = vld [vmem:[%s1036_s1 + $0x188] sm:$0xff]  ;;  %v552_v7 = vpack.c.bf16 %v23_v4, %v22_v2  ;;  %v24_v14 = vld [vmem:[%s1036_s1 + $0x10] sm:$0xff]  ;;  %v554_v16 = vpack.c.bf16 %v41_v13, %v40_v11 }
   0x4   :  { %v582_v8 = vpack.c.bf16 %v71_v6, %v70_v5  ;;  %v54_v9 = vld [vmem:[%s1036_s1 + $0x100] sm:$0xff]  ;;  %v55_v10 = vld [vmem:[%s1036_s1 + $0x108] sm:$0xff]  ;;  %551 = vmatprep.subr.bf16.mxu0 %v550_v3  ;;  %v25_v15 = vld [vmem:[%s1036_s1 + $0x18] sm:$0xff] }
   0x5   :  { %v584_v12 = vpack.c.bf16 %v55_v10, %v54_v9  ;;  %553 = vmatpush3.bf16.msra.mxu0 %v552_v7  ;;  %v556_v17 = vpack.c.bf16 %v25_v15, %v24_v14  ;;  %v72_v18 = vld [vmem:[%s1036_s1 + $0x190] sm:$0xff]  ;;  %v73_v19 = vld [vmem:[%s1036_s1 + $0x198] sm:$0xff]  ;;  %v42_v23 = vld [vmem:[%s1036_s1 + $0xa0] sm:$0xff] }
   0x6   :  { %583 = vmatprep.subr.bf16.mxu1 %v582_v8  ;;  %v56_v20 = vld [vmem:[%s1036_s1 + $0x110] sm:$0xff]  ;;  %v586_v21 = vpack.c.bf16 %v73_v19, %v72_v18  ;;  %v57_v22 = vld [vmem:[%s1036_s1 + $0x118] sm:$0xff]  ;;  %v43_v24 = vld [vmem:[%s1036_s1 + $0xa8] sm:$0xff]  ;;  %555 = vmatprep.subr.bf16.mxu0 %v554_v16 }
   0x7   :  { %585 = vmatpush3.bf16.msra.mxu1 %v584_v12  ;;  %v588_v25 = vpack.c.bf16 %v57_v22, %v56_v20  ;;  %v558_v26 = vpack.c.bf16 %v43_v24, %v42_v23  ;;  %v26_v27 = vld [vmem:[%s1036_s1 + $0x20] sm:$0xff]  ;;  %v27_v28 = vld [vmem:[%s1036_s1 + $0x28] sm:$0xff]  ;;  %v44_v35 = vld [vmem:[%s1036_s1 + $0xb0] sm:$0xff] }
   0x8   :  { %v74_v29 = vld [vmem:[%s1036_s1 + $0x1a0] sm:$0xff]  ;;  %587 = vmatprep.subr.bf16.mxu1 %v586_v21  ;;  %v75_v30 = vld [vmem:[%s1036_s1 + $0x1a8] sm:$0xff]  ;;  %v560_v33 = vpack.c.bf16 %v27_v28, %v26_v27  ;;  %v45_v36 = vld [vmem:[%s1036_s1 + $0xb8] sm:$0xff] }
   0x9   :  { %v58_v31 = vld [vmem:[%s1036_s1 + $0x120] sm:$0xff]  ;;  %v59_v32 = vld [vmem:[%s1036_s1 + $0x128] sm:$0xff]  ;;  %557 = vmatpush3.bf16.msra.mxu0 %v556_v17  ;;  %v590_v34 = vpack.c.bf16 %v75_v30, %v74_v29  ;;  %v28_v37 = vld [vmem:[%s1036_s1 + $0x30] sm:$0xff]  ;;  %v562_v39 = vpack.c.bf16 %v45_v36, %v44_v35 }
   0xa   :  { %559 = vmatprep.subr.bf16.mxu0 %v558_v26  ;;  %v592_v38 = vpack.c.bf16 %v59_v32, %v58_v31  ;;  %v29_v40 = vld [vmem:[%s1036_s1 + $0x38] sm:$0xff]  ;;  %v76_v41 = vld [vmem:[%s1036_s1 + $0x1b0] sm:$0xff]  ;;  %v46_v46 = vld [vmem:[%s1036_s1 + $0xc0] sm:$0xff] }
   0xb   :  { %589 = vmatpush3.bf16.msra.mxu1 %v588_v25  ;;  %v77_v42 = vld [vmem:[%s1036_s1 + $0x1b8] sm:$0xff]  ;;  %v60_v44 = vld [vmem:[%s1036_s1 + $0x130] sm:$0xff]  ;;  %v47_v47 = vld [vmem:[%s1036_s1 + $0xc8] sm:$0xff]  ;;  %v564_v48 = vpack.c.bf16 %v29_v40, %v28_v37 }
   0xc   :  { %591 = vmatprep.subr.bf16.mxu1 %v590_v34  ;;  %v594_v43 = vpack.c.bf16 %v77_v42, %v76_v41  ;;  %v61_v45 = vld [vmem:[%s1036_s1 + $0x138] sm:$0xff]  ;;  %v78_v49 = vld [vmem:[%s1036_s1 + $0x1c0] sm:$0xff]  ;;  %v79_v50 = vld [vmem:[%s1036_s1 + $0x1c8] sm:$0xff]  ;;  %v566_v52 = vpack.c.bf16 %v47_v47, %v46_v46 }
   0xd   :  { %561 = vmatpush3.bf16.msra.mxu0 %v560_v33  ;;  %v596_v51 = vpack.c.bf16 %v61_v45, %v60_v44  ;;  %v30_v53 = vld [vmem:[%s1036_s1 + $0x40] sm:$0xff]  ;;  %v31_v54 = vld [vmem:[%s1036_s1 + $0x48] sm:$0xff]  ;;  %v598_v56 = vpack.c.bf16 %v79_v50, %v78_v49  ;;  %v48_v58 = vld [vmem:[%s1036_s1 + $0xd0] sm:$0xff]  ;;  %v681_v50 = vmov 0.0|0.0  }
   0xe   :  { %563 = vmatprep.subr.bf16.mxu0 %v562_v39  ;;  %v62_v55 = vld [vmem:[%s1036_s1 + $0x140] sm:$0xff]  ;;  %v63_v57 = vld [vmem:[%s1036_s1 + $0x148] sm:$0xff]  ;;  %v49_v59 = vld [vmem:[%s1036_s1 + $0xd8] sm:$0xff]  ;;  %v568_v62 = vpack.c.bf16 %v31_v54, %v30_v53 }
   0xf   :  { %593 = vmatpush3.bf16.msra.mxu1 %v592_v38  ;;  %v80_v60 = vld [vmem:[%s1036_s1 + $0x1d0] sm:$0xff]  ;;  %v81_v61 = vld [vmem:[%s1036_s1 + $0x1d8] sm:$0xff]  ;;  %v600_v63 = vpack.c.bf16 %v63_v57, %v62_v55  ;;  %v570_v0 = vpack.c.bf16 %v49_v59, %v48_v58  ;;  %v50_v6 = vld [vmem:[%s1036_s1 + $0xe0] sm:$0xff] }
  0x10   :  { %595 = vmatprep.subr.bf16.mxu1 %v594_v43  ;;  %v32_v1 = vld [vmem:[%s1036_s1 + $0x50] sm:$0xff]  ;;  %v33_v2 = vld [vmem:[%s1036_s1 + $0x58] sm:$0xff]  ;;  %v602_v4 = vpack.c.bf16 %v81_v61, %v80_v60  ;;  %v51_v7 = vld [vmem:[%s1036_s1 + $0xe8] sm:$0xff] }
  0x11   :  { %565 = vmatpush3.bf16.msra.mxu0 %v564_v48  ;;  %v64_v3 = vld [vmem:[%s1036_s1 + $0x150] sm:$0xff]  ;;  %v65_v5 = vld [vmem:[%s1036_s1 + $0x158] sm:$0xff]  ;;  %v82_v8 = vld [vmem:[%s1036_s1 + $0x1e0] sm:$0xff]  ;;  %v572_v10 = vpack.c.bf16 %v33_v2, %v32_v1  ;;  %v574_v14 = vpack.c.bf16 %v51_v7, %v50_v6 }
  0x12   :  { %567 = vmatprep.subr.bf16.mxu0 %v566_v52  ;;  %v83_v9 = vld [vmem:[%s1036_s1 + $0x1e8] sm:$0xff]  ;;  %v34_v11 = vld [vmem:[%s1036_s1 + $0x60] sm:$0xff]  ;;  %v604_v13 = vpack.c.bf16 %v65_v5, %v64_v3  ;;  %v52_v19 = vld [vmem:[%s1036_s1 + $0xf0] sm:$0xff] }
  0x13   :  { %597 = vmatpush3.bf16.msra.mxu1 %v596_v51  ;;  %v16_v12 = vld [vmem:[%s1035_s0 + $0x8] sm:$0xff]  ;;  %v66_v16 = vld [vmem:[%s1036_s1 + $0x160] sm:$0xff]  ;;  %v606_v18 = vpack.c.bf16 %v83_v9, %v82_v8  ;;  %v53_v20 = vld [vmem:[%s1036_s1 + $0xf8] sm:$0xff] }
  0x14   :  { %599 = vmatprep.subr.bf16.mxu1 %v598_v56  ;;  %v35_v15 = vld [vmem:[%s1036_s1 + $0x68] sm:$0xff]  ;;  %195 = vmatprep.mubr.f32.mxu0 %v16_v12  ;;  %v18_v21 = vld [vmem:[%s1035_s0 + $0x18] sm:$0xff]  ;;  %v84_v22 = vld [vmem:[%s1036_s1 + $0x1f0] sm:$0xff]  ;;  %v578_v26 = vpack.c.bf16 %v53_v20, %v52_v19 }
  0x15   :  { %569 = vmatpush3.bf16.msra.mxu0 %v568_v62  ;;  %v67_v17 = vld [vmem:[%s1036_s1 + $0x168] sm:$0xff]  ;;  %v85_v23 = vld [vmem:[%s1036_s1 + $0x1f8] sm:$0xff]  ;;  %265 = vmatprep.mubr.f32.mxu1 %v18_v21  ;;  %v576_v24 = vpack.c.bf16 %v35_v15, %v34_v11  ;;  %v36_v27 = vld [vmem:[%s1036_s1 + $0x70] sm:$0xff] }
  0x16   :  { %571 = vmatprep.subr.bf16.mxu0 %v570_v0  ;;  %v608_v25 = vpack.c.bf16 %v67_v17, %v66_v16  ;;  %v37_v28 = vld [vmem:[%s1036_s1 + $0x78] sm:$0xff]  ;;  %v68_v29 = vld [vmem:[%s1036_s1 + $0x170] sm:$0xff]  ;;  %v610_v30 = vpack.c.bf16 %v85_v23, %v84_v22  ;;  %v102_v32 = vld [vmem:[%s1036_s1 + $0x280] sm:$0xff] }
  0x17   :  { %601 = vmatpush3.bf16.msra.mxu1 %v600_v63  ;;  %v69_v31 = vld [vmem:[%s1036_s1 + $0x178] sm:$0xff]  ;;  %v103_v33 = vld [vmem:[%s1036_s1 + $0x288] sm:$0xff]  ;;  %v580_v34 = vpack.c.bf16 %v37_v28, %v36_v27  ;;  %v86_v37 = vld [vmem:[%s1036_s1 + $0x200] sm:$0xff] }
  0x18   :  { %603 = vmatprep.subr.bf16.mxu1 %v602_v4  ;;  %v612_v35 = vpack.c.bf16 %v69_v31, %v68_v29  ;;  %v614_v36 = vpack.c.bf16 %v103_v33, %v102_v32  ;;  %v87_v38 = vld [vmem:[%s1036_s1 + $0x208] sm:$0xff]  ;;  %v104_v39 = vld [vmem:[%s1036_s1 + $0x290] sm:$0xff]  ;;  %v105_v40 = vld [vmem:[%s1036_s1 + $0x298] sm:$0xff] }
  0x19   :  { %573 = vmatpush3.bf16.msra.mxu0 %v572_v10  ;;  %v15_v41 = vld [vmem:[%s1035_s0] sm:$0xff]  ;;  %v616_v42 = vpack.c.bf16 %v87_v38, %v86_v37  ;;  %v17_v43 = vld [vmem:[%s1035_s0 + $0x10] sm:$0xff]  ;;  %v618_v45 = vpack.c.bf16 %v105_v40, %v104_v39  ;;  %v89_v46 = vld [vmem:[%s1036_s1 + $0x218] sm:$0xff] }
  0x1a   :  { %575 = vmatprep.subr.bf16.mxu0 %v574_v14  ;;  %v88_v44 = vld [vmem:[%s1036_s1 + $0x210] sm:$0xff]  ;;  %v106_v47 = vld [vmem:[%s1036_s1 + $0x2a0] sm:$0xff]  ;;  %v107_v48 = vld [vmem:[%s1036_s1 + $0x2a8] sm:$0xff] }
  0x1b   :  { %605 = vmatpush3.bf16.msra.mxu1 %v604_v13  ;;  %v20_v49 = vld [vmem:[%s1035_s0 + $0x28] sm:$0xff]  ;;  %v118_v51 = vld [vmem:[%s1036_s1 + $0x300] sm:$0xff] }
  0x1c   :  { %607 = vmatprep.subr.bf16.mxu1 %v606_v18  ;;  %v119_v52 = vld [vmem:[%s1036_s1 + $0x308] sm:$0xff] }
  0x1d   :  { %577 = vmatpush3.bf16.msra.mxu0 %v576_v24  ;;  %v647_v53 = vpack.c.bf16 %v119_v52, %v118_v51 }
  0x1e   :  { %579 = vmatprep.subr.bf16.mxu0 %v578_v26 }
  0x1f   :  { %609 = vmatpush3.bf16.msra.mxu1 %v608_v25 }
  0x20   :  { %611 = vmatprep.subr.bf16.mxu1 %v610_v30 }
  0x21   :  { %581 = vmatpush3.bf16.msra.mxu0 %v580_v34 }
  0x22   :  { %615 = vmatprep.subr.bf16.mxu0 %v614_v36 }
  0x23   :  { %613 = vmatpush3.bf16.msra.mxu1 %v612_v35 }
  0x24   :  { %646 = vmatprep.subr.bf16.mxu1 %v681_v50  ;;  %196 = vmatmul.mubr.f32.vlgmr.msra.gmra.mrb[0].mxu0 %v15_v41 }
  0x25   :  { %8 = vsyncpa [#allocation3], 0  ;;  %617 = vmatpush3.bf16.msra.mxu0 %v616_v42  ;;  %v620_v54 = vpack.c.bf16 %v89_v46, %v88_v44  ;;  %v622_v55 = vpack.c.bf16 %v107_v48, %v106_v47  ;;  %v90_v56 = vld [vmem:[%s1036_s1 + $0x220] sm:$0xff]  ;;  %v91_v57 = vld [vmem:[%s1036_s1 + $0x228] sm:$0xff]  ;;  %335 = vmatprep.mubr.f32.mxu0 %v20_v49  ;;  %vm682_vm0 = vmmov 0   ;;  %v683_v60 = vmov 0.0  }
  0x26   :  { %266 = vmatmul.mubr.f32.vlgmr.msra.gmra.mrb[0].mxu1 %v17_v43  ;;  %619 = vmatprep.subr.bf16.mxu0 %v618_v45  ;;  %v108_v58 = vld [vmem:[%s1036_s1 + $0x2b0] sm:$0xff]  ;;  %v109_v59 = vld [vmem:[%s1036_s1 + $0x2b8] sm:$0xff]  ;;  %vm127_vm1 = vcmask 130048   ;;  %v624_v62 = vpack.c.bf16 %v91_v57, %v90_v56  ;;  %v110_v2 = vld [vmem:[%s1036_s1 + $0x2c0] sm:$0xff]  ;;  %vm417_vm2 = vcmask 80896  }
  0x27   :  { %648 = vmatpush3.bf16.msra.mxu1 %v647_v53  ;;  %547 = vmatprep.mubr.msk.f32.mxu1 %vm682_vm0, %v683_v60  ;;  %v21_v61 = vld [vmem:[%s1035_s0 + $0x30] sm:$0xff]  ;;  %v626_v63 = vpack.c.bf16 %v109_v59, %v108_v58  ;;  %v93_v1 = vld [vmem:[%s1036_s1 + $0x238] sm:$0xff]  ;;  %v111_v3 = vld [vmem:[%s1036_s1 + $0x2c8] sm:$0xff] }
  0x28   :  { %v92_v0 = vld [vmem:[%s1036_s1 + $0x230] sm:$0xff]  ;;  %v630_v5 = vpack.c.bf16 %v111_v3, %v110_v2  ;;  %v94_v6 = vld [vmem:[%s1036_s1 + $0x240] sm:$0xff]  ;;  %v95_v7 = vld [vmem:[%s1036_s1 + $0x248] sm:$0xff] }
  0x29   :  { %621 = vmatpush3.bf16.msra.mxu0 %v620_v54  ;;  %v628_v4 = vpack.c.bf16 %v93_v1, %v92_v0  ;;  %v112_v8 = vld [vmem:[%s1036_s1 + $0x2d0] sm:$0xff]  ;;  %v113_v9 = vld [vmem:[%s1036_s1 + $0x2d8] sm:$0xff]  ;;  %v632_v10 = vpack.c.bf16 %v95_v7, %v94_v6  ;;  %v114_v14 = vld [vmem:[%s1036_s1 + $0x2e0] sm:$0xff] }
  0x2a   :  { %623 = vmatprep.subr.bf16.mxu0 %v622_v55  ;;  %548 = vmatmul.mubr.msk.f32.vlgmr.msra.gmra.mrb[2].mxu1 %vm127_vm1, %v21_v61  ;;  %v634_v11 = vpack.c.bf16 %v113_v9, %v112_v8  ;;  %v96_v12 = vld [vmem:[%s1036_s1 + $0x250] sm:$0xff]  ;;  %v97_v13 = vld [vmem:[%s1036_s1 + $0x258] sm:$0xff]  ;;  %v115_v15 = vld [vmem:[%s1036_s1 + $0x2e8] sm:$0xff] }
  0x2b   :  { %v636_v16 = vpack.c.bf16 %v97_v13, %v96_v12  ;;  %v638_v17 = vpack.c.bf16 %v115_v15, %v114_v14  ;;  %v98_v18 = vld [vmem:[%s1036_s1 + $0x260] sm:$0xff]  ;;  %v99_v19 = vld [vmem:[%s1036_s1 + $0x268] sm:$0xff]  ;;  %v116_v20 = vld [vmem:[%s1036_s1 + $0x2f0] sm:$0xff] }
  0x2c   :  { %v117_v21 = vld [vmem:[%s1036_s1 + $0x2f8] sm:$0xff]  ;;  %v640_v22 = vpack.c.bf16 %v99_v19, %v98_v18  ;;  %v100_v24 = vld [vmem:[%s1036_s1 + $0x270] sm:$0xff]  ;;  %v19_v27 = vld [vmem:[%s1035_s0 + $0x20] sm:$0xff]  ;;  %s684_s0 = smov [#allocation2]  }
  0x2d   :  { %625 = vmatpush3.bf16.msra.mxu0 %v624_v62  ;;  %v642_v23 = vpack.c.bf16 %v117_v21, %v116_v20  ;;  %v101_v25 = vld [vmem:[%s1036_s1 + $0x278] sm:$0xff]  ;;  %v433_v29 = vld [vmem:[%s1037_s2] ss:$0 sm:$0xff]  ;;  %s425_s1 = sshll.u32 %s684_s0, 4  ;;  %s426_s1 = int_to_ptr.vmem [resolvable:$true] %s425_s1 }
  0x2e   :  { %627 = vmatprep.subr.bf16.mxu0 %v626_v63  ;;  %v644_v26 = vpack.c.bf16 %v101_v25, %v100_v24  ;;  %s657_s2 = scalar_lea.vmem %s426_s1, 128  ;;  %p662_p1 = scmp.lt.s32.totalorder %s426_s1, %s426_s1 }
  0x2f   :  { %p658_p0 = scmp.ne.s32.totalorder %s426_s1, %s657_s2  ;;  %p663_p2 = scmp.lt.s32.totalorder %s657_s2, %s657_s2 }
  0x31   :  { %629 = vmatpush3.bf16.msra.mxu0 %v628_v4  ;;  %p664_p3 = por %p663_p2, %p662_p1 }
  0x32   :  { %631 = vmatprep.subr.bf16.mxu0 %v630_v5 }
  0x33   :  { %p665_p4 = pnand %p664_p3, %p658_p0 }
  0x35   :  { %633 = vmatpush3.bf16.msra.mxu0 %v632_v10 }
  0x36   :  { %635 = vmatprep.subr.bf16.mxu0 %v634_v11 }
  0x39   :  { %637 = vmatpush3.bf16.msra.mxu0 %v636_v16 }
  0x3a   :  { %639 = vmatprep.subr.bf16.mxu0 %v638_v17 }
  0x3d   :  { %641 = vmatpush3.bf16.msra.mxu0 %v640_v22 }
  0x3e   :  { %643 = vmatprep.subr.bf16.mxu0 %v642_v23 }
  0x41   :  { %645 = vmatpush3.bf16.msra.mxu0 %v644_v26 }
  0x44   :  { %336 = vmatmul.mubr.f32.vlgmr.msra.gmra.mrb[2].mxu0 %v19_v27 }
  0xf7   :  { %v467_v28 = vpop.f32.mrb[0].mxu0 }
  0xf8   :  { %v468_v30 = vpop.f32.mrb[1].mxu0 }
  0xf9   :  { %v502_v31 = vpop.f32.mrb[0].mxu1  ;;  %v469_v32 = vadd.f32 %v468_v30, %v467_v28 }
  0xfa   :  { %v503_v33 = vpop.f32.mrb[1].mxu1 }
  0xfb   :  { %v504_v34 = vadd.f32 %v503_v33, %v502_v31  ;;  %v198_v35 = vadd.f32 %v469_v32, %v433_v29 }
  0xfd   :  { %v268_v36 = vadd.f32 %v504_v34, %v198_v35  ;;  %v407_v37 = vpop.f32.mrb[2].mxu1 }
  0xfe   :  { %v549_v38 = vpop.f32.mrb[3].mxu1 }
 0x117   :  { %v537_v39 = vpop.f32.mrb[2].mxu0 }
 0x118   :  { %v538_v40 = vpop.f32.mrb[3].mxu0 }
 0x119   :  { %v539_v41 = vadd.f32 %v538_v40, %v537_v39 }
 0x11b   :  { %v338_v42 = vadd.f32 %v539_v41, %v268_v36 }
 0x11d   :  { %v408_v43 = vadd.f32 %v407_v37, %v338_v42 }
 0x11f   :  { %v411_v44 = vsub.f32 0.0, %v408_v43 }
 0x121   :  { %v412_v45 = vmul.f32 1.442695, %v411_v44 }
 0x123   :  { %653 = vpow2.f32 %v412_v45 }
 0x12d   :  { %v654_v46 = vpop.eup %653 }
 0x12e   :  { %v414_v47 = vadd.f32 1.0, %v654_v46 }
 0x130   :  { %655 = vrcp.f32 %v414_v47 }
 0x13a   :  { %v656_v48 = vpop.eup %655 }
 0x13b   :  { %418 = vst.msk [vmem:[#allocation2] sm:$0xff] %vm417_vm2, %v656_v48 }
 0x13c   :  { %668 = shalt.err (!%p665_p4)
}
 0x13d   :  { %s669_s10 = scalar_lea.hbm %s1038_s3, 128 }
 0x13e   :  { %p670_p5 = scmp.ne.s32.totalorder %s1038_s3, %s669_s10  ;;  %p673_p6 = scmp.lt.u32.totalorder %s669_s10, %s1038_s3 }
 0x140   :  { %p675_p7 = pnand %p673_p6, %p670_p5 }
 0x142   :  { %678 = shalt.err (!%p675_p7)
}
 0x143   :  { %428 = dma.vmem_to_hbm [thread:$0]  %s426_s1, 128, %s1038_s3, [#allocation3]  }
 0x144   :  { %679 = dma.done.wait [#allocation3], 128  }
 0x145   :  { %680 = vsyncadd [#allocation3], 4294967168 }
 0x146   :  { %432 = vsyncpa [#allocation3], 1 }

</bundles_post_ra>
